<compile_context>
chip_gen: v7x
topology: tpu7x:2x2x1
jax: 0.10.0
libtpu: 0.0.40
codegen_flags: <defaults>
</compile_context>

<pallas_src>
import functools
import math

import jax
import jax.numpy as jnp
from jax.experimental import pallas as pl
from jax.experimental.pallas import tpu as pltpu

LN_EPS = 1e-5


def _layernorm(x, gamma, beta):
    mean = jnp.mean(x, axis=-1, keepdims=True)
    xc = x - mean
    var = jnp.mean(xc * xc, axis=-1, keepdims=True)
    inv = jax.lax.rsqrt(var + LN_EPS)
    return xc * inv * gamma + beta


def _block_kernel(
    emb_ref,        # (Bt, S, D)  f32 embeddings (batch tile)
    wqkv_ref,       # (D, 3D)     bf16 fused Wq|Wk|Wv (scale folded into Q)
    woh_ref,        # (H, dh, D)  bf16 head-major Wo rows
    w1_ref,         # (D, F)      bf16
    w2_ref,         # (F, D)      bf16
    wfc_ref,        # (D, Vp)     bf16 vocab-padded
    small_ref,      # (8, P)      f32 stacked: bqkv, bo, ln1_g, ln1_b, b1, b2, ln2_g, ln2_b
    bfc_ref,        # (1, Vp)     f32 vocab-padded
    out_ref,        # (Bt, S, Vp) f32
    *, num_heads,
):
    Bt, S, D = emb_ref.shape
    H = num_heads
    dh = D // H
    M = Bt * S
    F = w1_ref.shape[1]
    bf16 = jnp.bfloat16

    x = emb_ref[...].reshape(M, D)            # (M, D) f32, batch rows fused
    x16 = x.astype(bf16)

    small = small_ref[...]                    # one small DMA'd block, sliced statically
    bqkv = small[0:1, : 3 * D]
    bo = small[1:2, :D]
    g1 = small[2:3, :D]
    be1 = small[3:4, :D]
    b1 = small[4:5, :F]
    b2 = small[5:6, :D]
    g2 = small[6:7, :D]
    be2 = small[7:8, :D]

    # --- fused QKV projection: one wide matmul instead of 3*H narrow ones ---
    qkv = jnp.dot(x16, wqkv_ref[...],
                  preferred_element_type=jnp.float32) + bqkv          # (M, 3D) f32

    # --- multi-head attention: batched einsums over the batch axis per head ---
    # (attention-internal tensors stay f32; they are tiny and bf16 casts are
    #  pure VALU overhead, especially on v5e)
    attn = jnp.zeros((M, D), jnp.float32)
    for h in range(H):                        # static python loop over heads
        o = h * dh
        qh = qkv[:, o:o + dh].reshape(Bt, S, dh)
        kh = qkv[:, D + o:D + o + dh].reshape(Bt, S, dh)
        vh = qkv[:, 2 * D + o:2 * D + o + dh].reshape(Bt, S, dh)

        s = jnp.einsum("bqd,bkd->bqk", qh, kh,
                       preferred_element_type=jnp.float32)            # (Bt, S, S)
        s = s - jnp.max(s, axis=-1, keepdims=True)
        e = jnp.exp(s)
        p = e * pl.reciprocal(jnp.sum(e, axis=-1, keepdims=True), approx=True)
        ctx_h = jnp.einsum("bqk,bkd->bqd", p, vh,
                           preferred_element_type=jnp.float32)        # (Bt, S, dh)

        # accumulate this head's contribution through its rows of Wo
        attn = attn + jnp.dot(ctx_h.reshape(M, dh).astype(bf16), woh_ref[h],
                              preferred_element_type=jnp.float32)
    attn = attn + bo

    # --- residual + layernorm 1 ---
    h1 = _layernorm(x + attn, g1, be1)

    # --- feed-forward ---
    ff = jnp.dot(h1.astype(bf16), w1_ref[...],
                 preferred_element_type=jnp.float32) + b1
    ff = jnp.maximum(ff, 0.0)
    ff = jnp.dot(ff.astype(bf16), w2_ref[...],
                 preferred_element_type=jnp.float32) + b2

    # --- residual + layernorm 2 ---
    h2 = _layernorm(h1 + ff, g2, be2)

    # --- final projection to (padded) vocab: lane-dense store ---
    logits = jnp.dot(h2.astype(bf16), wfc_ref[...],
                     preferred_element_type=jnp.float32) + bfc_ref[...]
    out_ref[...] = logits.reshape(Bt, S, -1)


def _pick_batch_tile(B, S):
    """Batch rows per grid step.

    The grid is a sequential loop on single-TC chips (v5e/v6e), so small
    problems run as one grid step (fixed ~0.35us/step cost dominates at a
    handful of rows).  Only split — for v7x megacore / VMEM bounding — when
    each tile still carries a few hundred fused matmul rows.
    """
    if B < 2 or B * S < 512:
        return B
    bt = max(1, min(B, max(1, 256 // max(S, 1))))
    while B % bt:
        bt -= 1
    return bt


def pack_params(params, *, num_heads):
    """One-time weight repacking for the kernel (hoisted out of the per-call path)."""
    D = params["wq"].shape[0]
    H = num_heads
    dh = D // H
    F = params["w1"].shape[1]
    V = params["wfc"].shape[1]
    Vp = ((V + 127) // 128) * 128            # lane-dense vocab padding
    bf16 = jnp.bfloat16
    scale = 1.0 / math.sqrt(dh)

    # Fused QKV weight/bias, attention scale folded into the Q columns.
    wqkv = jnp.concatenate(
        [params["wq"] * scale, params["wk"], params["wv"]], axis=1).astype(bf16)   # (D, 3D)
    bqkv = jnp.concatenate(
        [params["bq"] * scale, params["bk"], params["bv"]], axis=1)                # (1, 3D)
    woh = params["wo"].reshape(H, dh, D).astype(bf16)                              # (H, dh, D)

    # Stack the small bias / LN vectors into one block (single DMA).
    P = max(3 * D, F, D)

    def row(vec):
        vec = vec.reshape(1, -1)
        return jnp.pad(vec, ((0, 0), (0, P - vec.shape[1])))

    small = jnp.concatenate(
        [row(bqkv), row(params["bo"]),
         row(params["ln1_g"]), row(params["ln1_b"]),
         row(params["b1"]), row(params["b2"]),
         row(params["ln2_g"]), row(params["ln2_b"])], axis=0)                      # (8, P)

    return {
        "embedding": params["embedding"],
        "wqkv": wqkv,
        "woh": woh,
        "w1": params["w1"].astype(bf16),
        "w2": params["w2"].astype(bf16),
        "wfc": jnp.pad(params["wfc"], ((0, 0), (0, Vp - V))).astype(bf16),
        "bfc": jnp.pad(params["bfc"], ((0, 0), (0, Vp - V))),
        "small": small,
        "num_heads": H,
        "vocab_size": V,
    }


def reverse_sequence_forward(token_ids, packed, *, unpad_output=True):
    # Embedding lookup (glue gather in plain JAX).
    emb = jnp.take(packed["embedding"], token_ids, axis=0)   # (B, S, D) f32
    B, S, D = emb.shape
    H = packed["num_heads"]
    dh = D // H
    F = packed["w1"].shape[1]
    Vp = packed["wfc"].shape[1]
    V = packed["vocab_size"]
    P = packed["small"].shape[1]

    bt = _pick_batch_tile(B, S)
    n_tiles = B // bt

    # Grid-invariant weights: single-buffer them when the grid has >1 step
    # (no point paying 2x VMEM / re-DMA bookkeeping for constant index_maps).
    w_kwargs = {} if n_tiles == 1 else {"pipeline_mode": pl.Buffered(1)}

    def wspec(shape):
        nd = len(shape)
        return pl.BlockSpec(shape, lambda i, _nd=nd: (0,) * _nd, **w_kwargs)

    in_specs = [
        pl.BlockSpec((bt, S, D), lambda i: (i, 0, 0)),       # embeddings, batch tile
        wspec((D, 3 * D)),                                   # fused Wqkv
        wspec((H, dh, D)),                                   # Wo (head-major)
        wspec((D, F)),                                       # W1
        wspec((F, D)),                                       # W2
        wspec((D, Vp)),                                      # Wfc (vocab-padded)
        wspec((8, P)),                                       # stacked biases + LN params
        wspec((1, Vp)),                                      # bfc (vocab-padded)
    ]

    kernel = functools.partial(_block_kernel, num_heads=H)

    out = pl.pallas_call(
        kernel,
        out_shape=jax.ShapeDtypeStruct((B, S, Vp), jnp.float32),
        grid_spec=pltpu.PrefetchScalarGridSpec(
            num_scalar_prefetch=0,
            grid=(n_tiles,),
            in_specs=in_specs,
            out_specs=pl.BlockSpec((bt, S, Vp), lambda i: (i, 0, 0)),
        ),
        compiler_params=pltpu.CompilerParams(
            dimension_semantics=("parallel",)),
    )(
        emb,
        packed["wqkv"], packed["woh"],
        packed["w1"], packed["w2"], packed["wfc"],
        packed["small"], packed["bfc"],
    )
    if unpad_output and Vp != V:
        # Consumers that accept Vp-padded logits can pass unpad_output=False
        # and skip this extra HBM copy (padded columns are exactly zero-weight).
        out = out[:, :, :V]
    return out


def reference_forward(token_ids, params, *, num_heads):
    """Pure-JAX f32 reference of the same forward pass (for correctness check)."""
    x = jnp.take(params["embedding"], token_ids, axis=0)     # (B, S, D)
    B, S, D = x.shape
    d_head = D // num_heads

    q = x @ params["wq"] + params["bq"]
    k = x @ params["wk"] + params["bk"]
    v = x @ params["wv"] + params["bv"]

    def split(t):
        return t.reshape(B, S, num_heads, d_head).transpose(0, 2, 1, 3)

    qh, kh, vh = split(q), split(k), split(v)
    scores = jnp.einsum("bhqd,bhkd->bhqk", qh, kh) / math.sqrt(d_head)
    p = jax.nn.softmax(scores, axis=-1)
    ctx = jnp.einsum("bhqk,bhkd->bhqd", p, vh).transpose(0, 2, 1, 3).reshape(B, S, D)
    attn_out = ctx @ params["wo"] + params["bo"]

    h1 = _layernorm(x + attn_out, params["ln1_g"], params["ln1_b"])
    ff = jnp.maximum(h1 @ params["w1"] + params["b1"], 0.0) @ params["w2"] + params["b2"]
    h2 = _layernorm(h1 + ff, params["ln2_g"], params["ln2_b"])
    return h2 @ params["wfc"] + params["bfc"]


def init_params(key, vocab_size, d_model, d_ff):
    ks = jax.random.split(key, 8)
    n = lambda k, shape, s=0.02: (jax.random.normal(k, shape, jnp.float32) * s)
    return {
        "embedding": n(ks[0], (vocab_size, d_model), 1.0),
        "wq": n(ks[1], (d_model, d_model)), "bq": jnp.zeros((1, d_model), jnp.float32),
        "wk": n(ks[2], (d_model, d_model)), "bk": jnp.zeros((1, d_model), jnp.float32),
        "wv": n(ks[3], (d_model, d_model)), "bv": jnp.zeros((1, d_model), jnp.float32),
        "wo": n(ks[4], (d_model, d_model)), "bo": jnp.zeros((1, d_model), jnp.float32),
        "ln1_g": jnp.ones((1, d_model), jnp.float32),
        "ln1_b": jnp.zeros((1, d_model), jnp.float32),
        "w1": n(ks[5], (d_model, d_ff)), "b1": jnp.zeros((1, d_ff), jnp.float32),
        "w2": n(ks[6], (d_ff, d_model)), "b2": jnp.zeros((1, d_model), jnp.float32),
        "ln2_g": jnp.ones((1, d_model), jnp.float32),
        "ln2_b": jnp.zeros((1, d_model), jnp.float32),
        "wfc": n(ks[7], (d_model, vocab_size)), "bfc": jnp.zeros((1, vocab_size), jnp.float32),
    }


if __name__ == "__main__":
    vocab_size, d_model, num_heads, d_ff = 64, 32, 4, 64
    B, S = 2, 8

    key = jax.random.PRNGKey(0)
    pkey, xkey = jax.random.split(key)
    params = init_params(pkey, vocab_size, d_model, d_ff)
    token_ids = jax.random.randint(xkey, (B, S), 0, vocab_size, dtype=jnp.int32)

    # One-time weight repacking (hoisted out of the per-call path).
    packed = pack_params(params, num_heads=num_heads)

    out = reverse_sequence_forward(token_ids, packed)
    out = jax.block_until_ready(out)

    ref = reference_forward(token_ids, params, num_heads=num_heads)
    assert out.shape == (B, S, vocab_size)
    # bf16 weights + approx softmax reciprocal -> slightly looser tolerance than pure f32
    assert jnp.allclose(out, ref, atol=2e-2, rtol=2e-2), "mismatch vs reference"

    print("KERNEL_OK")
</pallas_src>

<mosaic_0001>
module attributes {stable_mosaic.version = 11 : i64} {
  func.func @_block_kernel(%arg0: i32, %arg1: memref<2x8x32xf32, #tpu.memory_space<vmem>>, %arg2: memref<32x96xbf16, #tpu.memory_space<vmem>>, %arg3: memref<4x8x32xbf16, #tpu.memory_space<vmem>>, %arg4: memref<32x64xbf16, #tpu.memory_space<vmem>>, %arg5: memref<64x32xbf16, #tpu.memory_space<vmem>>, %arg6: memref<32x128xbf16, #tpu.memory_space<vmem>>, %arg7: memref<8x96xf32, #tpu.memory_space<vmem>>, %arg8: memref<1x128xf32, #tpu.memory_space<vmem>>, %arg9: memref<2x8x128xf32, #tpu.memory_space<vmem>>) attributes {dimension_semantics = [#tpu.dimension_semantics<parallel>], iteration_bounds = array<i64: 1>, scalar_prefetch = 0 : i64, scratch_operands = 0 : i64, tpu.core_type = #tpu.core_type<tc>, window_params = [{transform_indices = @transform_0, window_bounds = array<i64: 2, 8, 32>}, {pipeline_mode = #tpu.pipeline_mode<synchronous>, transform_indices = @transform_1, window_bounds = array<i64: 32, 96>}, {pipeline_mode = #tpu.pipeline_mode<synchronous>, transform_indices = @transform_2, window_bounds = array<i64: 4, 8, 32>}, {pipeline_mode = #tpu.pipeline_mode<synchronous>, transform_indices = @transform_3, window_bounds = array<i64: 32, 64>}, {pipeline_mode = #tpu.pipeline_mode<synchronous>, transform_indices = @transform_4, window_bounds = array<i64: 64, 32>}, {pipeline_mode = #tpu.pipeline_mode<synchronous>, transform_indices = @transform_5, window_bounds = array<i64: 32, 128>}, {pipeline_mode = #tpu.pipeline_mode<synchronous>, transform_indices = @transform_6, window_bounds = array<i64: 8, 96>}, {pipeline_mode = #tpu.pipeline_mode<synchronous>, transform_indices = @transform_7, window_bounds = array<i64: 1, 128>}, {transform_indices = @transform_8, window_bounds = array<i64: 2, 8, 128>}]} {
    %c0 = arith.constant 0 : index
    %c0_0 = arith.constant 0 : index
    %c0_1 = arith.constant 0 : index
    %0 = vector.load %arg1[%c0, %c0_0, %c0_1] : memref<2x8x32xf32, #tpu.memory_space<vmem>>, vector<2x8x32xf32>
    %1 = vector.shape_cast %0 : vector<2x8x32xf32> to vector<16x32xf32>
    %2 = arith.truncf %1 : vector<16x32xf32> to vector<16x32xbf16>
    %c0_2 = arith.constant 0 : index
    %c0_3 = arith.constant 0 : index
    %3 = vector.load %arg7[%c0_2, %c0_3] : memref<8x96xf32, #tpu.memory_space<vmem>>, vector<8x96xf32>
    %4 = vector.extract_strided_slice %3 {offsets = [0, 0], sizes = [1, 96], strides = [1, 1]} : vector<8x96xf32> to vector<1x96xf32>
    %5 = vector.extract_strided_slice %3 {offsets = [1, 0], sizes = [1, 32], strides = [1, 1]} : vector<8x96xf32> to vector<1x32xf32>
    %6 = vector.extract_strided_slice %3 {offsets = [2, 0], sizes = [1, 32], strides = [1, 1]} : vector<8x96xf32> to vector<1x32xf32>
    %7 = vector.extract_strided_slice %3 {offsets = [3, 0], sizes = [1, 32], strides = [1, 1]} : vector<8x96xf32> to vector<1x32xf32>
    %8 = vector.extract_strided_slice %3 {offsets = [4, 0], sizes = [1, 64], strides = [1, 1]} : vector<8x96xf32> to vector<1x64xf32>
    %9 = vector.extract_strided_slice %3 {offsets = [5, 0], sizes = [1, 32], strides = [1, 1]} : vector<8x96xf32> to vector<1x32xf32>
    %10 = vector.extract_strided_slice %3 {offsets = [6, 0], sizes = [1, 32], strides = [1, 1]} : vector<8x96xf32> to vector<1x32xf32>
    %11 = vector.extract_strided_slice %3 {offsets = [7, 0], sizes = [1, 32], strides = [1, 1]} : vector<8x96xf32> to vector<1x32xf32>
    %c0_4 = arith.constant 0 : index
    %c0_5 = arith.constant 0 : index
    %12 = vector.load %arg2[%c0_4, %c0_5] : memref<32x96xbf16, #tpu.memory_space<vmem>>, vector<32x96xbf16>
    %cst = arith.constant dense<0.000000e+00> : vector<16x96xf32>
    %13 = tpu.matmul %2, %12, %cst {dimension_numbers = #tpu.dot_dimension_numbers<[1], [0], [0], [1], [0, 0, 1, 1], [], []>} : vector<16x32xbf16>, vector<32x96xbf16>, vector<16x96xf32> -> vector<16x96xf32>
    %14 = vector.broadcast %4 : vector<1x96xf32> to vector<16x96xf32>
    %15 = arith.addf %13, %14 : vector<16x96xf32>
    %cst_6 = arith.constant 0.000000e+00 : f32
    %16 = vector.broadcast %cst_6 : f32 to vector<16x32xf32>
    %17 = vector.extract_strided_slice %15 {offsets = [0, 0], sizes = [16, 8], strides = [1, 1]} : vector<16x96xf32> to vector<16x8xf32>
    %18 = vector.shape_cast %17 : vector<16x8xf32> to vector<2x8x8xf32>
    %19 = vector.extract_strided_slice %15 {offsets = [0, 32], sizes = [16, 8], strides = [1, 1]} : vector<16x96xf32> to vector<16x8xf32>
    %20 = vector.shape_cast %19 : vector<16x8xf32> to vector<2x8x8xf32>
    %21 = vector.extract_strided_slice %15 {offsets = [0, 64], sizes = [16, 8], strides = [1, 1]} : vector<16x96xf32> to vector<16x8xf32>
    %22 = vector.shape_cast %21 : vector<16x8xf32> to vector<2x8x8xf32>
    "tpu.trace_start"() <{level = 10 : i32, message = "bqd,bkd->bqk"}> : () -> ()
    %cst_7 = arith.constant dense<0.000000e+00> : vector<2x8x8xf32>
    %23 = tpu.matmul %18, %20, %cst_7 {dimension_numbers = #tpu.dot_dimension_numbers<[2], [2], [1], [1], [0, 0, 0, 1, 1, 1], [0], [0]>} : vector<2x8x8xf32>, vector<2x8x8xf32>, vector<2x8x8xf32> -> vector<2x8x8xf32>
    "tpu.trace_stop"() : () -> ()
    %cst_8 = arith.constant dense<0xFF800000> : vector<2x8xf32>
    %24 = vector.multi_reduction <maximumf>, %23, %cst_8 [2] : vector<2x8x8xf32> to vector<2x8xf32>
    %25 = vector.shape_cast %24 : vector<2x8xf32> to vector<2x8x1xf32>
    %26 = vector.broadcast %25 : vector<2x8x1xf32> to vector<2x8x8xf32>
    %27 = arith.subf %23, %26 : vector<2x8x8xf32>
    %28 = math.exp %27 : vector<2x8x8xf32>
    %cst_9 = arith.constant dense<0.000000e+00> : vector<2x8xf32>
    %29 = vector.multi_reduction <add>, %28, %cst_9 [2] : vector<2x8x8xf32> to vector<2x8xf32>
    %30 = vector.shape_cast %29 : vector<2x8xf32> to vector<2x8x1xf32>
    %31 = tpu.reciprocal %30 {approx = true} : vector<2x8x1xf32> -> vector<2x8x1xf32>
    %32 = vector.broadcast %31 : vector<2x8x1xf32> to vector<2x8x8xf32>
    %33 = arith.mulf %28, %32 : vector<2x8x8xf32>
    "tpu.trace_start"() <{level = 10 : i32, message = "bqk,bkd->bqd"}> : () -> ()
    %cst_10 = arith.constant dense<0.000000e+00> : vector<2x8x8xf32>
    %34 = tpu.matmul %33, %22, %cst_10 {dimension_numbers = #tpu.dot_dimension_numbers<[2], [1], [1], [2], [0, 0, 0, 1, 1, 2], [0], [0]>} : vector<2x8x8xf32>, vector<2x8x8xf32>, vector<2x8x8xf32> -> vector<2x8x8xf32>
    "tpu.trace_stop"() : () -> ()
    %35 = vector.shape_cast %34 : vector<2x8x8xf32> to vector<16x8xf32>
    %36 = arith.truncf %35 : vector<16x8xf32> to vector<16x8xbf16>
    %c0_11 = arith.constant 0 : index
    %c0_12 = arith.constant 0 : index
    %c0_13 = arith.constant 0 : index
    %37 = vector.load %arg3[%c0_11, %c0_12, %c0_13] : memref<4x8x32xbf16, #tpu.memory_space<vmem>>, vector<1x8x32xbf16>
    %38 = vector.shape_cast %37 : vector<1x8x32xbf16> to vector<8x32xbf16>
    %cst_14 = arith.constant dense<0.000000e+00> : vector<16x32xf32>
    %39 = tpu.matmul %36, %38, %cst_14 {dimension_numbers = #tpu.dot_dimension_numbers<[1], [0], [0], [1], [0, 0, 1, 1], [], []>} : vector<16x8xbf16>, vector<8x32xbf16>, vector<16x32xf32> -> vector<16x32xf32>
    %40 = arith.addf %16, %39 : vector<16x32xf32>
    %41 = vector.extract_strided_slice %15 {offsets = [0, 8], sizes = [16, 8], strides = [1, 1]} : vector<16x96xf32> to vector<16x8xf32>
    %42 = vector.shape_cast %41 : vector<16x8xf32> to vector<2x8x8xf32>
    %43 = vector.extract_strided_slice %15 {offsets = [0, 40], sizes = [16, 8], strides = [1, 1]} : vector<16x96xf32> to vector<16x8xf32>
    %44 = vector.shape_cast %43 : vector<16x8xf32> to vector<2x8x8xf32>
    %45 = vector.extract_strided_slice %15 {offsets = [0, 72], sizes = [16, 8], strides = [1, 1]} : vector<16x96xf32> to vector<16x8xf32>
    %46 = vector.shape_cast %45 : vector<16x8xf32> to vector<2x8x8xf32>
    "tpu.trace_start"() <{level = 10 : i32, message = "bqd,bkd->bqk"}> : () -> ()
    %cst_15 = arith.constant dense<0.000000e+00> : vector<2x8x8xf32>
    %47 = tpu.matmul %42, %44, %cst_15 {dimension_numbers = #tpu.dot_dimension_numbers<[2], [2], [1], [1], [0, 0, 0, 1, 1, 1], [0], [0]>} : vector<2x8x8xf32>, vector<2x8x8xf32>, vector<2x8x8xf32> -> vector<2x8x8xf32>
    "tpu.trace_stop"() : () -> ()
    %cst_16 = arith.constant dense<0xFF800000> : vector<2x8xf32>
    %48 = vector.multi_reduction <maximumf>, %47, %cst_16 [2] : vector<2x8x8xf32> to vector<2x8xf32>
    %49 = vector.shape_cast %48 : vector<2x8xf32> to vector<2x8x1xf32>
    %50 = vector.broadcast %49 : vector<2x8x1xf32> to vector<2x8x8xf32>
    %51 = arith.subf %47, %50 : vector<2x8x8xf32>
    %52 = math.exp %51 : vector<2x8x8xf32>
    %cst_17 = arith.constant dense<0.000000e+00> : vector<2x8xf32>
    %53 = vector.multi_reduction <add>, %52, %cst_17 [2] : vector<2x8x8xf32> to vector<2x8xf32>
    %54 = vector.shape_cast %53 : vector<2x8xf32> to vector<2x8x1xf32>
    %55 = tpu.reciprocal %54 {approx = true} : vector<2x8x1xf32> -> vector<2x8x1xf32>
    %56 = vector.broadcast %55 : vector<2x8x1xf32> to vector<2x8x8xf32>
    %57 = arith.mulf %52, %56 : vector<2x8x8xf32>
    "tpu.trace_start"() <{level = 10 : i32, message = "bqk,bkd->bqd"}> : () -> ()
    %cst_18 = arith.constant dense<0.000000e+00> : vector<2x8x8xf32>
    %58 = tpu.matmul %57, %46, %cst_18 {dimension_numbers = #tpu.dot_dimension_numbers<[2], [1], [1], [2], [0, 0, 0, 1, 1, 2], [0], [0]>} : vector<2x8x8xf32>, vector<2x8x8xf32>, vector<2x8x8xf32> -> vector<2x8x8xf32>
    "tpu.trace_stop"() : () -> ()
    %59 = vector.shape_cast %58 : vector<2x8x8xf32> to vector<16x8xf32>
    %60 = arith.truncf %59 : vector<16x8xf32> to vector<16x8xbf16>
    %c1 = arith.constant 1 : index
    %c0_19 = arith.constant 0 : index
    %c0_20 = arith.constant 0 : index
    %61 = vector.load %arg3[%c1, %c0_19, %c0_20] : memref<4x8x32xbf16, #tpu.memory_space<vmem>>, vector<1x8x32xbf16>
    %62 = vector.shape_cast %61 : vector<1x8x32xbf16> to vector<8x32xbf16>
    %cst_21 = arith.constant dense<0.000000e+00> : vector<16x32xf32>
    %63 = tpu.matmul %60, %62, %cst_21 {dimension_numbers = #tpu.dot_dimension_numbers<[1], [0], [0], [1], [0, 0, 1, 1], [], []>} : vector<16x8xbf16>, vector<8x32xbf16>, vector<16x32xf32> -> vector<16x32xf32>
    %64 = arith.addf %40, %63 : vector<16x32xf32>
    %65 = vector.extract_strided_slice %15 {offsets = [0, 16], sizes = [16, 8], strides = [1, 1]} : vector<16x96xf32> to vector<16x8xf32>
    %66 = vector.shape_cast %65 : vector<16x8xf32> to vector<2x8x8xf32>
    %67 = vector.extract_strided_slice %15 {offsets = [0, 48], sizes = [16, 8], strides = [1, 1]} : vector<16x96xf32> to vector<16x8xf32>
    %68 = vector.shape_cast %67 : vector<16x8xf32> to vector<2x8x8xf32>
    %69 = vector.extract_strided_slice %15 {offsets = [0, 80], sizes = [16, 8], strides = [1, 1]} : vector<16x96xf32> to vector<16x8xf32>
    %70 = vector.shape_cast %69 : vector<16x8xf32> to vector<2x8x8xf32>
    "tpu.trace_start"() <{level = 10 : i32, message = "bqd,bkd->bqk"}> : () -> ()
    %cst_22 = arith.constant dense<0.000000e+00> : vector<2x8x8xf32>
    %71 = tpu.matmul %66, %68, %cst_22 {dimension_numbers = #tpu.dot_dimension_numbers<[2], [2], [1], [1], [0, 0, 0, 1, 1, 1], [0], [0]>} : vector<2x8x8xf32>, vector<2x8x8xf32>, vector<2x8x8xf32> -> vector<2x8x8xf32>
    "tpu.trace_stop"() : () -> ()
    %cst_23 = arith.constant dense<0xFF800000> : vector<2x8xf32>
    %72 = vector.multi_reduction <maximumf>, %71, %cst_23 [2] : vector<2x8x8xf32> to vector<2x8xf32>
    %73 = vector.shape_cast %72 : vector<2x8xf32> to vector<2x8x1xf32>
    %74 = vector.broadcast %73 : vector<2x8x1xf32> to vector<2x8x8xf32>
    %75 = arith.subf %71, %74 : vector<2x8x8xf32>
    %76 = math.exp %75 : vector<2x8x8xf32>
    %cst_24 = arith.constant dense<0.000000e+00> : vector<2x8xf32>
    %77 = vector.multi_reduction <add>, %76, %cst_24 [2] : vector<2x8x8xf32> to vector<2x8xf32>
    %78 = vector.shape_cast %77 : vector<2x8xf32> to vector<2x8x1xf32>
    %79 = tpu.reciprocal %78 {approx = true} : vector<2x8x1xf32> -> vector<2x8x1xf32>
    %80 = vector.broadcast %79 : vector<2x8x1xf32> to vector<2x8x8xf32>
    %81 = arith.mulf %76, %80 : vector<2x8x8xf32>
    "tpu.trace_start"() <{level = 10 : i32, message = "bqk,bkd->bqd"}> : () -> ()
    %cst_25 = arith.constant dense<0.000000e+00> : vector<2x8x8xf32>
    %82 = tpu.matmul %81, %70, %cst_25 {dimension_numbers = #tpu.dot_dimension_numbers<[2], [1], [1], [2], [0, 0, 0, 1, 1, 2], [0], [0]>} : vector<2x8x8xf32>, vector<2x8x8xf32>, vector<2x8x8xf32> -> vector<2x8x8xf32>
    "tpu.trace_stop"() : () -> ()
    %83 = vector.shape_cast %82 : vector<2x8x8xf32> to vector<16x8xf32>
    %84 = arith.truncf %83 : vector<16x8xf32> to vector<16x8xbf16>
    %c2 = arith.constant 2 : index
    %c0_26 = arith.constant 0 : index
    %c0_27 = arith.constant 0 : index
    %85 = vector.load %arg3[%c2, %c0_26, %c0_27] : memref<4x8x32xbf16, #tpu.memory_space<vmem>>, vector<1x8x32xbf16>
    %86 = vector.shape_cast %85 : vector<1x8x32xbf16> to vector<8x32xbf16>
    %cst_28 = arith.constant dense<0.000000e+00> : vector<16x32xf32>
    %87 = tpu.matmul %84, %86, %cst_28 {dimension_numbers = #tpu.dot_dimension_numbers<[1], [0], [0], [1], [0, 0, 1, 1], [], []>} : vector<16x8xbf16>, vector<8x32xbf16>, vector<16x32xf32> -> vector<16x32xf32>
    %88 = arith.addf %64, %87 : vector<16x32xf32>
    %89 = vector.extract_strided_slice %15 {offsets = [0, 24], sizes = [16, 8], strides = [1, 1]} : vector<16x96xf32> to vector<16x8xf32>
    %90 = vector.shape_cast %89 : vector<16x8xf32> to vector<2x8x8xf32>
    %91 = vector.extract_strided_slice %15 {offsets = [0, 56], sizes = [16, 8], strides = [1, 1]} : vector<16x96xf32> to vector<16x8xf32>
    %92 = vector.shape_cast %91 : vector<16x8xf32> to vector<2x8x8xf32>
    %93 = vector.extract_strided_slice %15 {offsets = [0, 88], sizes = [16, 8], strides = [1, 1]} : vector<16x96xf32> to vector<16x8xf32>
    %94 = vector.shape_cast %93 : vector<16x8xf32> to vector<2x8x8xf32>
    "tpu.trace_start"() <{level = 10 : i32, message = "bqd,bkd->bqk"}> : () -> ()
    %cst_29 = arith.constant dense<0.000000e+00> : vector<2x8x8xf32>
    %95 = tpu.matmul %90, %92, %cst_29 {dimension_numbers = #tpu.dot_dimension_numbers<[2], [2], [1], [1], [0, 0, 0, 1, 1, 1], [0], [0]>} : vector<2x8x8xf32>, vector<2x8x8xf32>, vector<2x8x8xf32> -> vector<2x8x8xf32>
    "tpu.trace_stop"() : () -> ()
    %cst_30 = arith.constant dense<0xFF800000> : vector<2x8xf32>
    %96 = vector.multi_reduction <maximumf>, %95, %cst_30 [2] : vector<2x8x8xf32> to vector<2x8xf32>
    %97 = vector.shape_cast %96 : vector<2x8xf32> to vector<2x8x1xf32>
    %98 = vector.broadcast %97 : vector<2x8x1xf32> to vector<2x8x8xf32>
    %99 = arith.subf %95, %98 : vector<2x8x8xf32>
    %100 = math.exp %99 : vector<2x8x8xf32>
    %cst_31 = arith.constant dense<0.000000e+00> : vector<2x8xf32>
    %101 = vector.multi_reduction <add>, %100, %cst_31 [2] : vector<2x8x8xf32> to vector<2x8xf32>
    %102 = vector.shape_cast %101 : vector<2x8xf32> to vector<2x8x1xf32>
    %103 = tpu.reciprocal %102 {approx = true} : vector<2x8x1xf32> -> vector<2x8x1xf32>
    %104 = vector.broadcast %103 : vector<2x8x1xf32> to vector<2x8x8xf32>
    %105 = arith.mulf %100, %104 : vector<2x8x8xf32>
    "tpu.trace_start"() <{level = 10 : i32, message = "bqk,bkd->bqd"}> : () -> ()
    %cst_32 = arith.constant dense<0.000000e+00> : vector<2x8x8xf32>
    %106 = tpu.matmul %105, %94, %cst_32 {dimension_numbers = #tpu.dot_dimension_numbers<[2], [1], [1], [2], [0, 0, 0, 1, 1, 2], [0], [0]>} : vector<2x8x8xf32>, vector<2x8x8xf32>, vector<2x8x8xf32> -> vector<2x8x8xf32>
    "tpu.trace_stop"() : () -> ()
    %107 = vector.shape_cast %106 : vector<2x8x8xf32> to vector<16x8xf32>
    %108 = arith.truncf %107 : vector<16x8xf32> to vector<16x8xbf16>
    %c3 = arith.constant 3 : index
    %c0_33 = arith.constant 0 : index
    %c0_34 = arith.constant 0 : index
    %109 = vector.load %arg3[%c3, %c0_33, %c0_34] : memref<4x8x32xbf16, #tpu.memory_space<vmem>>, vector<1x8x32xbf16>
    %110 = vector.shape_cast %109 : vector<1x8x32xbf16> to vector<8x32xbf16>
    %cst_35 = arith.constant dense<0.000000e+00> : vector<16x32xf32>
    %111 = tpu.matmul %108, %110, %cst_35 {dimension_numbers = #tpu.dot_dimension_numbers<[1], [0], [0], [1], [0, 0, 1, 1], [], []>} : vector<16x8xbf16>, vector<8x32xbf16>, vector<16x32xf32> -> vector<16x32xf32>
    %112 = arith.addf %88, %111 : vector<16x32xf32>
    %113 = vector.broadcast %5 : vector<1x32xf32> to vector<16x32xf32>
    %114 = arith.addf %112, %113 : vector<16x32xf32>
    %115 = arith.addf %1, %114 : vector<16x32xf32>
    %cst_36 = arith.constant dense<0.000000e+00> : vector<16xf32>
    %116 = vector.multi_reduction <add>, %115, %cst_36 [1] : vector<16x32xf32> to vector<16xf32>
    %117 = vector.shape_cast %116 : vector<16xf32> to vector<16x1xf32>
    %cst_37 = arith.constant 3.200000e+01 : f32
    %118 = vector.broadcast %cst_37 : f32 to vector<16x1xf32>
    %119 = arith.divf %117, %118 : vector<16x1xf32>
    %120 = vector.broadcast %119 : vector<16x1xf32> to vector<16x32xf32>
    %121 = arith.subf %115, %120 : vector<16x32xf32>
    %122 = arith.mulf %121, %121 : vector<16x32xf32>
    %cst_38 = arith.constant dense<0.000000e+00> : vector<16xf32>
    %123 = vector.multi_reduction <add>, %122, %cst_38 [1] : vector<16x32xf32> to vector<16xf32>
    %124 = vector.shape_cast %123 : vector<16xf32> to vector<16x1xf32>
    %cst_39 = arith.constant 3.200000e+01 : f32
    %125 = vector.broadcast %cst_39 : f32 to vector<16x1xf32>
    %126 = arith.divf %124, %125 : vector<16x1xf32>
    %cst_40 = arith.constant 9.99999974E-6 : f32
    %127 = vector.broadcast %cst_40 : f32 to vector<16x1xf32>
    %128 = arith.addf %126, %127 : vector<16x1xf32>
    %129 = math.rsqrt %128 : vector<16x1xf32>
    %130 = vector.broadcast %129 : vector<16x1xf32> to vector<16x32xf32>
    %131 = arith.mulf %121, %130 : vector<16x32xf32>
    %132 = vector.broadcast %6 : vector<1x32xf32> to vector<16x32xf32>
    %133 = arith.mulf %131, %132 : vector<16x32xf32>
    %134 = vector.broadcast %7 : vector<1x32xf32> to vector<16x32xf32>
    %135 = arith.addf %133, %134 : vector<16x32xf32>
    %136 = arith.truncf %135 : vector<16x32xf32> to vector<16x32xbf16>
    %c0_41 = arith.constant 0 : index
    %c0_42 = arith.constant 0 : index
    %137 = vector.load %arg4[%c0_41, %c0_42] : memref<32x64xbf16, #tpu.memory_space<vmem>>, vector<32x64xbf16>
    %cst_43 = arith.constant dense<0.000000e+00> : vector<16x64xf32>
    %138 = tpu.matmul %136, %137, %cst_43 {dimension_numbers = #tpu.dot_dimension_numbers<[1], [0], [0], [1], [0, 0, 1, 1], [], []>} : vector<16x32xbf16>, vector<32x64xbf16>, vector<16x64xf32> -> vector<16x64xf32>
    %139 = vector.broadcast %8 : vector<1x64xf32> to vector<16x64xf32>
    %140 = arith.addf %138, %139 : vector<16x64xf32>
    %cst_44 = arith.constant 0.000000e+00 : f32
    %141 = vector.broadcast %cst_44 : f32 to vector<16x64xf32>
    %142 = arith.maximumf %140, %141 : vector<16x64xf32>
    %143 = arith.truncf %142 : vector<16x64xf32> to vector<16x64xbf16>
    %c0_45 = arith.constant 0 : index
    %c0_46 = arith.constant 0 : index
    %144 = vector.load %arg5[%c0_45, %c0_46] : memref<64x32xbf16, #tpu.memory_space<vmem>>, vector<64x32xbf16>
    %cst_47 = arith.constant dense<0.000000e+00> : vector<16x32xf32>
    %145 = tpu.matmul %143, %144, %cst_47 {dimension_numbers = #tpu.dot_dimension_numbers<[1], [0], [0], [1], [0, 0, 1, 1], [], []>} : vector<16x64xbf16>, vector<64x32xbf16>, vector<16x32xf32> -> vector<16x32xf32>
    %146 = vector.broadcast %9 : vector<1x32xf32> to vector<16x32xf32>
    %147 = arith.addf %145, %146 : vector<16x32xf32>
    %148 = arith.addf %135, %147 : vector<16x32xf32>
    %cst_48 = arith.constant dense<0.000000e+00> : vector<16xf32>
    %149 = vector.multi_reduction <add>, %148, %cst_48 [1] : vector<16x32xf32> to vector<16xf32>
    %150 = vector.shape_cast %149 : vector<16xf32> to vector<16x1xf32>
    %cst_49 = arith.constant 3.200000e+01 : f32
    %151 = vector.broadcast %cst_49 : f32 to vector<16x1xf32>
    %152 = arith.divf %150, %151 : vector<16x1xf32>
    %153 = vector.broadcast %152 : vector<16x1xf32> to vector<16x32xf32>
    %154 = arith.subf %148, %153 : vector<16x32xf32>
    %155 = arith.mulf %154, %154 : vector<16x32xf32>
    %cst_50 = arith.constant dense<0.000000e+00> : vector<16xf32>
    %156 = vector.multi_reduction <add>, %155, %cst_50 [1] : vector<16x32xf32> to vector<16xf32>
    %157 = vector.shape_cast %156 : vector<16xf32> to vector<16x1xf32>
    %cst_51 = arith.constant 3.200000e+01 : f32
    %158 = vector.broadcast %cst_51 : f32 to vector<16x1xf32>
    %159 = arith.divf %157, %158 : vector<16x1xf32>
    %cst_52 = arith.constant 9.99999974E-6 : f32
    %160 = vector.broadcast %cst_52 : f32 to vector<16x1xf32>
    %161 = arith.addf %159, %160 : vector<16x1xf32>
    %162 = math.rsqrt %161 : vector<16x1xf32>
    %163 = vector.broadcast %162 : vector<16x1xf32> to vector<16x32xf32>
    %164 = arith.mulf %154, %163 : vector<16x32xf32>
    %165 = vector.broadcast %10 : vector<1x32xf32> to vector<16x32xf32>
    %166 = arith.mulf %164, %165 : vector<16x32xf32>
    %167 = vector.broadcast %11 : vector<1x32xf32> to vector<16x32xf32>
    %168 = arith.addf %166, %167 : vector<16x32xf32>
    %169 = arith.truncf %168 : vector<16x32xf32> to vector<16x32xbf16>
    %c0_53 = arith.constant 0 : index
    %c0_54 = arith.constant 0 : index
    %170 = vector.load %arg6[%c0_53, %c0_54] : memref<32x128xbf16, #tpu.memory_space<vmem>>, vector<32x128xbf16>
    %cst_55 = arith.constant dense<0.000000e+00> : vector<16x128xf32>
    %171 = tpu.matmul %169, %170, %cst_55 {dimension_numbers = #tpu.dot_dimension_numbers<[1], [0], [0], [1], [0, 0, 1, 1], [], []>} : vector<16x32xbf16>, vector<32x128xbf16>, vector<16x128xf32> -> vector<16x128xf32>
    %c0_56 = arith.constant 0 : index
    %c0_57 = arith.constant 0 : index
    %172 = vector.load %arg8[%c0_56, %c0_57] : memref<1x128xf32, #tpu.memory_space<vmem>>, vector<1x128xf32>
    %173 = vector.broadcast %172 : vector<1x128xf32> to vector<16x128xf32>
    %174 = arith.addf %171, %173 : vector<16x128xf32>
    %175 = vector.shape_cast %174 : vector<16x128xf32> to vector<2x8x128xf32>
    %c0_58 = arith.constant 0 : index
    %c0_59 = arith.constant 0 : index
    %c0_60 = arith.constant 0 : index
    %176 = vector.load %arg9[%c0_58, %c0_59, %c0_60] : memref<2x8x128xf32, #tpu.memory_space<vmem>>, vector<2x8x128xf32>
    tpu.vector_store %arg9[%c0_58, %c0_59, %c0_60], %175 {strides = array<i32>} : memref<2x8x128xf32, #tpu.memory_space<vmem>>, vector<2x8x128xf32>,
    return
  }
  func.func @transform_0(%arg0: i32) -> (i32, i32, i32) {
    %c0_i32 = arith.constant 0 : i32
    %c0_i32_0 = arith.constant 0 : i32
    %c0_i32_1 = arith.constant 0 : i32
    return %arg0, %c0_i32, %c0_i32_0 : i32, i32, i32
  }
  func.func @transform_1(%arg0: i32) -> (i32, i32) {
    %c0_i32 = arith.constant 0 : i32
    %c0_i32_0 = arith.constant 0 : i32
    %c0_i32_1 = arith.constant 0 : i32
    return %c0_i32, %c0_i32_0 : i32, i32
  }
  func.func @transform_2(%arg0: i32) -> (i32, i32, i32) {
    %c0_i32 = arith.constant 0 : i32
    %c0_i32_0 = arith.constant 0 : i32
    %c0_i32_1 = arith.constant 0 : i32
    %c0_i32_2 = arith.constant 0 : i32
    return %c0_i32, %c0_i32_0, %c0_i32_1 : i32, i32, i32
  }
  func.func @transform_3(%arg0: i32) -> (i32, i32) {
    %c0_i32 = arith.constant 0 : i32
    %c0_i32_0 = arith.constant 0 : i32
    %c0_i32_1 = arith.constant 0 : i32
    return %c0_i32, %c0_i32_0 : i32, i32
  }
  func.func @transform_4(%arg0: i32) -> (i32, i32) {
    %c0_i32 = arith.constant 0 : i32
    %c0_i32_0 = arith.constant 0 : i32
    %c0_i32_1 = arith.constant 0 : i32
    return %c0_i32, %c0_i32_0 : i32, i32
  }
  func.func @transform_5(%arg0: i32) -> (i32, i32) {
    %c0_i32 = arith.constant 0 : i32
    %c0_i32_0 = arith.constant 0 : i32
    %c0_i32_1 = arith.constant 0 : i32
    return %c0_i32, %c0_i32_0 : i32, i32
  }
  func.func @transform_6(%arg0: i32) -> (i32, i32) {
    %c0_i32 = arith.constant 0 : i32
    %c0_i32_0 = arith.constant 0 : i32
    %c0_i32_1 = arith.constant 0 : i32
    return %c0_i32, %c0_i32_0 : i32, i32
  }
  func.func @transform_7(%arg0: i32) -> (i32, i32) {
    %c0_i32 = arith.constant 0 : i32
    %c0_i32_0 = arith.constant 0 : i32
    %c0_i32_1 = arith.constant 0 : i32
    return %c0_i32, %c0_i32_0 : i32, i32
  }
  func.func @transform_8(%arg0: i32) -> (i32, i32, i32) {
    %c0_i32 = arith.constant 0 : i32
    %c0_i32_0 = arith.constant 0 : i32
    %c0_i32_1 = arith.constant 0 : i32
    return %arg0, %c0_i32, %c0_i32_0 : i32, i32, i32
  }
}

</mosaic_0001>

<bundles_post_ra>
// kernel: tpu_custom_call.1
= control target key start
LH: loop header
LB: loop body
LE: loop exit
PB: predicated region body
PF: predicated region fallthrough
CT: control target
= control target key end

     0   :  { %13 = vsyncpa [#allocation3], 0  ;;  %s2714_s0 = inlined_call_operand.vmem [shape: f32[2,8,32], index: 0, kind: input, shape index: {}]   ;;  %s2715_s1 = inlined_call_operand.vmem [shape: bf16[32,96], index: 1, kind: input, shape index: {}]   ;;  %s2716_s2 = inlined_call_operand.vmem [shape: bf16[4,8,32], index: 2, kind: input, shape index: {}]   ;;  %s2717_s3 = inlined_call_operand.hbm [shape: bf16[32,64], index: 3, kind: input, shape index: {}]   ;;  %s2718_s4 = inlined_call_operand.vmem [shape: bf16[64,32], index: 4, kind: input, shape index: {}]   ;;  %s2719_s5 = inlined_call_operand.vmem [shape: bf16[32,128], index: 5, kind: input, shape index: {}]   ;;  %s2720_s6 = inlined_call_operand.hbm [shape: f32[8,96], index: 6, kind: input, shape index: {}]   ;;  %s2721_s7 = inlined_call_operand.vmem [shape: f32[1,128], index: 7, kind: input, shape index: {}]   ;;  %s2722_s8 = inlined_call_operand.hbm [shape: f32[2,8,128], index: 8, kind: output, shape index: {}]  }
   0x1   :  { %14 = vsyncpa [#allocation6], 0 }
   0x2   :  { %15 = vsyncpa [#allocation4], 0  ;;  %s2354_s27 = smov [#allocation2]   ;;  %s2282_s9 = scalar_lea.hbm %s2717_s3, 256 }
   0x3   :  { %s27_s28 = sshll.u32 %s2354_s27, 4  ;;  %p2283_p0 = scmp.ne.s32.totalorder %s2717_s3, %s2282_s9  ;;  %s28_s28 = int_to_ptr.vmem [resolvable:$true] %s27_s28 }
   0x4   :  { %p2286_p1 = scmp.lt.u32.totalorder %s2282_s9, %s2717_s3 }
   0x6   :  { %p2288_p2 = pnand %p2286_p1, %p2283_p0 }
   0x8   :  { %2291 = shalt.err (!%p2288_p2)
}
   0x9   :  { %s2292_s14 = scalar_lea.vmem %s28_s28, 256  ;;  %p2297_p4 = scmp.lt.s32.totalorder %s28_s28, %s28_s28 }
   0xa   :  { %p2293_p3 = scmp.ne.s32.totalorder %s28_s28, %s2292_s14  ;;  %p2298_p5 = scmp.lt.s32.totalorder %s2292_s14, %s2292_s14 }
   0xc   :  { %p2299_p6 = por %p2298_p5, %p2297_p4 }
   0xe   :  { %p2300_p7 = pnand %p2299_p6, %p2293_p3 }
  0x10   :  { %2303 = shalt.err (!%p2300_p7)
}
  0x11   :  { %s2355_s15 = smov 64   ;;  %s2356_s16 = smov 4  }
  0x12   :  { %33 = dma.hbm_to_vmem [thread:$0]  %s2717_s3, 256, %s28_s28, [#allocation3], %s2355_s15, %s2355_s15, %s2356_s16  }
  0x13   :  { %s2357_s19 = smov [#allocation5]   ;;  %s2304_s23 = scalar_lea.hbm %s2720_s6, 128 }
  0x14   :  { %s44_s20 = sshll.u32 %s2357_s19, 4  ;;  %p2305_p8 = scmp.ne.s32.totalorder %s2720_s6, %s2304_s23  ;;  %s45_s20 = int_to_ptr.vmem [resolvable:$true] %s44_s20 }
  0x15   :  { %p2308_p9 = scmp.lt.u32.totalorder %s2304_s23, %s2720_s6 }
  0x17   :  { %p2310_p10 = pnand %p2308_p9, %p2305_p8 }
  0x19   :  { %2313 = shalt.err (!%p2310_p10)
}
  0x1a   :  { %s2314_s29 = scalar_lea.vmem %s45_s20, 128  ;;  %p2319_p12 = scmp.lt.s32.totalorder %s45_s20, %s45_s20 }
  0x1b   :  { %p2315_p11 = scmp.ne.s32.totalorder %s45_s20, %s2314_s29  ;;  %p2320_p13 = scmp.lt.s32.totalorder %s2314_s29, %s2314_s29 }
  0x1d   :  { %p2321_p0 = por %p2320_p13, %p2319_p12 }
  0x1f   :  { %p2322_p1 = pnand %p2321_p0, %p2315_p11 }
  0x21   :  { %2325 = shalt.err (!%p2322_p1)
}
  0x22   :  { %47 = dma.hbm_to_vmem [thread:$0]  %s2720_s6, 128, %s45_s20, [#allocation6]  }
  0x23   :  { %2348 = dma.done.wait [#allocation3], 256  }
  0x24   :  { %2349 = vsyncadd [#allocation3], 4294967040 }
  0x25   :  { %2350 = dma.done.wait [#allocation6], 128  }
  0x26   :  { %2351 = vsyncadd [#allocation6], 4294967168  ;;  %v2358_v0 = vmov 0.0   ;;  %vm2359_vm0 = vmmov 0   ;;  %v2232_v1 = vld [vmem:[%s2715_s1] sm:$0xff]   ;;  %v2233_v2 = vld [vmem:[%s2715_s1 + $0x8] sm:$0xff]   ;;  %v65_v6 = vlaneseq }
  0x27   :  { %2073 = vmatprep.subr.bf16.mxu0 %v2358_v0  ;;  %2077 = vmatprep.mubr.msk.bf16.mxu0 %vm2359_vm0, %v2358_v0  ;;  %v2459_v3 = vld [vmem:[%s2714_s0] sm:$0xff]  ;;  %v2464_v4 = vld [vmem:[%s2714_s0 + $0x8] sm:$0xff]  ;;  %vm81_vm1 = vcmask 261120   ;;  %v2476_v9 = vld [vmem:[#allocation5] sm:$0xff]  ;;  %s2360_s0 = smov 96   ;;  %vm129_vm2 = vcmask 64512  }
  0x28   :  { %2081 = vmatprep.subr.mxu1 %v2358_v0  ;;  %2083 = vmatprep.mubr.msk.f32.mxu1 %vm2359_vm0, %v2358_v0  ;;  %v59_v5 = vpack.c.bf16 %v2464_v4, %v2459_v3  ;;  %v2473_v7 = vshrl.u32 %v65_v6, 7  ;;  %s2361_s1 = smov 88   ;;  %s2363_s16 = smov 56   ;;  %vm793_vm3 = vcmask 1043456   ;;  %vm1800_vm4 = vcmask 523264  }
  0x29   :  { %2074 = vmatpush3.bf16.msra.mxu0 %v2232_v1  ;;  %s2364_s17 = smov 80   ;;  %s2365_s18 = smov 112  }
  0x2a   :  { %2075 = vmatprep.subr.bf16.mxu0 %v2358_v0  ;;  %v67_v8 = vsub.s32 0, %v2473_v7  ;;  %s2366_s19 = smov 72   ;;  %s2367_s24 = smov 48  }
  0x2b   :  { %s2368_s25 = smov 104   ;;  %s2369_s26 = smov 40  }
  0x2c   :  { %v68_v10 = vrot.slane %v2476_v9, %v67_v8 }
  0x2d   :  { %2076 = vmatpush3.bf16.msra.mxu0 %v2233_v2 }
  0x2e   :  { %2096 = vmatprep.subr.mxu0 %v2358_v0 }
  0x30   :  { %2078 = vmatmul.mubr.msk.bf16.vlgmr.msra.gmra.mrb[0].mxu0 %vm81_vm1, %v59_v5 }
  0x31   :  { %2098 = vmatprep.mubr.msk.f32.mxu0 %vm2359_vm0, %v2358_v0 }
 0x103   :  { %v119_v11 = vpop.f32.mrb[0].mxu0 }
 0x104   :  { %v2479_v12 = vadd.f32 %v119_v11, %v68_v10  ;;  %v2079_v13 = vpop.f32.mrb[1].mxu0 }
 0x105   :  { %v122_v14 = vpop.f32.mrb[2].mxu0 }
 0x106   :  { %127 = vrot.lane.b32.xlu0 %v2479_v12, %s2360_s0  ;;  %v2080_v15 = vpop.f32.mrb[3].mxu0  ;;  %v2482_v16 = vadd.f32 %v122_v14, %v68_v10  ;;  %v1988_v14 = vld [vmem:[%s2716_s2 + $0x4] sm:$0xf] }
 0x10a   :  { %205 = vrot.lane.b32.xlu0 %v2482_v16, %s2360_s0 }
 0x178   :  { %v128_v17 = vpop.permute.xlu0 %127 }
 0x179   :  { %2082 = vmatpush3.xpose.msk.msra.mxu1 %vm129_vm2, %v128_v17 }
 0x17a   :  { %2086 = vmatprep.subr.mxu1 %v2358_v0 }
 0x17c   :  { %2084 = vmatmul.mubr.msk.f32.vlgmr.msra.gmra.mrb[0].mxu1 %vm129_vm2, %v2479_v12  ;;  %v206_v18 = vpop.permute.xlu0 %205 }
 0x17d   :  { %2087 = vmatpush3.xpose.msk.msra.mxu1 %vm129_vm2, %v206_v18  ;;  %2088 = vmatprep.mubr.msk.f32.mxu1 %vm2359_vm0, %v2358_v0  ;;  %v795_v18 = vsel %vm793_vm3, %v1988_v14, 0 }
 0x17e   :  { %2091 = vmatprep.subr.mxu1 %v2358_v0 }
 0x180   :  { %2089 = vmatmul.mubr.msk.f32.vlgmr.msra.gmra.mrb[2].mxu1 %vm129_vm2, %v2482_v16 }
 0x181   :  { %2093 = vmatprep.mubr.msk.f32.mxu1 %vm2359_vm0, %v2358_v0 }
 0x24f   :  { %v200_v19 = vpop.f32.mrb[0].mxu1 }
 0x250   :  { %v2085_v20 = vpop.f32.mrb[1].mxu1  ;;  %v281_v21 = vsel %vm129_vm2, %v200_v19, -inf }
 0x251   :  { %282 = vmax.xlane.f32.xlu1 %v281_v21 }
 0x253   :  { %v277_v22 = vpop.f32.mrb[2].mxu1 }
 0x254   :  { %v2090_v23 = vpop.f32.mrb[3].mxu1  ;;  %v284_v24 = vsel %vm129_vm2, %v277_v22, -inf }
 0x255   :  { %285 = vmax.xlane.f32.xlu1 %v284_v24 }
 0x266   :  { %303 = vrot.lane.b32.xlu1 %v2479_v12, %s2355_s15 }
 0x26a   :  { %379 = vrot.lane.b32.xlu1 %v2482_v16, %s2355_s15  ;;  %s2362_s15 = smov 120  }
 0x26e   :  { %459 = vrot.lane.b32.xlu1 %v2479_v12, %s2361_s1 }
 0x272   :  { %537 = vrot.lane.b32.xlu1 %v2482_v16, %s2361_s1 }
 0x2de   :  { %v283_v25 = vpop.xlane.xlu1 %282 }
 0x2df   :  { %v287_v26 = vsub.f32 %v200_v19, %v283_v25  ;;  %v456_v19 = vld [vmem:[%s2716_s2] sm:$0xf] }
 0x2e1   :  { %v289_v27 = vmul.f32 1.442695, %v287_v26 }
 0x2e2   :  { %v286_v28 = vpop.xlane.xlu1 %285 }
 0x2e3   :  { %2242 = vpow2.f32 %v289_v27  ;;  %v288_v29 = vsub.f32 %v277_v22, %v286_v28  ;;  %v842_v22 = vsel %vm793_vm3, %v456_v19, 0 }
 0x2e5   :  { %v291_v30 = vmul.f32 1.442695, %v288_v29 }
 0x2e6   :  { %v304_v31 = vpop.permute.xlu1 %303 }
 0x2e7   :  { %2244 = vpow2.f32 %v291_v30  ;;  %2092 = vmatpush3.msra.mxu1 %v304_v31 }
 0x2e8   :  { %2101 = vmatprep.subr.mxu1 %v2358_v0 }
 0x2ea   :  { %v380_v32 = vpop.permute.xlu1 %379 }
 0x2eb   :  { %2097 = vmatpush3.msra.mxu0 %v380_v32 }
 0x2ec   :  { %2106 = vmatprep.subr.mxu0 %v2358_v0 }
 0x2ed   :  { %v2243_v33 = vpop.eup %2242 }
 0x2ee   :  { %v293_v34 = vsel %vm129_vm2, %v2243_v33, 0.0  ;;  %v460_v37 = vpop.permute.xlu1 %459 }
 0x2ef   :  { %294 = vadd.xlane.f32.xlu0 %v293_v34 }
 0x2f1   :  { %v2245_v35 = vpop.eup %2244 }
 0x2f2   :  { %v296_v36 = vsel %vm129_vm2, %v2245_v35, 0.0  ;;  %v538_v38 = vpop.permute.xlu1 %537 }
 0x2f3   :  { %297 = vadd.xlane.f32.xlu1 %v296_v36 }
 0x304   :  { %535 = vrot.lane.b32.xlu1 %v2482_v16, %s2362_s15 }
 0x305   :  { %457 = vrot.lane.b32.xlu0 %v2479_v12, %s2362_s15 }
 0x37c   :  { %v295_v39 = vpop.xlane.xlu0 %294 }
 0x37d   :  { %2246 = vrcp.f32 %v295_v39 }
 0x380   :  { %v298_v40 = vpop.xlane.xlu1 %297  ;;  %v458_v45 = vpop.permute.xlu0 %457 }
 0x381   :  { %2248 = vrcp.f32 %v298_v40 }
 0x384   :  { %v536_v46 = vpop.permute.xlu1 %535 }
 0x387   :  { %v2247_v41 = vpop.eup %2246 }
 0x388   :  { %v301_v42 = vmul.f32 %v2247_v41, %v2243_v33 }
 0x38a   :  { %2094 = vmatmul.mubr.msk.f32.vlgmr.msra.gmra.mrb[4].mxu1 %vm129_vm2, %v301_v42 }
 0x38b   :  { %v2249_v43 = vpop.eup %2248  ;;  %2102 = vmatpush3.xpose.msk.msra.mxu1 %vm129_vm2, %v460_v37  ;;  %2103 = vmatprep.mubr.msk.f32.mxu1 %vm2359_vm0, %v2358_v0 }
 0x38c   :  { %v302_v44 = vmul.f32 %v2249_v43, %v2245_v35  ;;  %2111 = vmatprep.subr.mxu1 %v2358_v0 }
 0x38e   :  { %2099 = vmatmul.mubr.msk.f32.vlgmr.msra.gmra.mrb[4].mxu0 %vm129_vm2, %v302_v44  ;;  %2104 = vmatmul.mubr.msk.f32.vlgmr.msra.gmra.mrb[6].mxu1 %vm129_vm2, %v458_v45 }
 0x38f   :  { %2107 = vmatpush3.xpose.msk.msra.mxu0 %vm129_vm2, %v538_v38  ;;  %2108 = vmatprep.mubr.msk.f32.mxu0 %vm2359_vm0, %v2358_v0 }
 0x390   :  { %2116 = vmatprep.subr.mxu0 %v2358_v0  ;;  %2113 = vmatprep.mubr.msk.f32.mxu1 %vm2359_vm0, %v2358_v0 }
 0x392   :  { %2109 = vmatmul.mubr.msk.f32.vlgmr.msra.gmra.mrb[6].mxu0 %vm129_vm2, %v536_v46 }
 0x393   :  { %2118 = vmatprep.mubr.msk.f32.mxu0 %vm2359_vm0, %v2358_v0 }
 0x45d   :  { %v2527_v47 = vpop.f32.mrb[4].mxu1 }
 0x45e   :  { %v2095_v48 = vpop.f32.mrb[5].mxu1 }
 0x461   :  { %v2529_v49 = vpop.f32.mrb[4].mxu0  ;;  %v531_v50 = vpop.f32.mrb[6].mxu1 }
 0x462   :  { %v455_v51 = vpack.c.bf16 %v2529_v49, %v2527_v47  ;;  %v2100_v52 = vpop.f32.mrb[5].mxu0  ;;  %v2105_v53 = vpop.f32.mrb[7].mxu1  ;;  %v613_v54 = vsel %vm129_vm2, %v531_v50, -inf }
 0x463   :  { %614 = vmax.xlane.f32.xlu1 %v613_v54 }
 0x465   :  { %v609_v55 = vpop.f32.mrb[6].mxu0 }
 0x466   :  { %v2110_v56 = vpop.f32.mrb[7].mxu0  ;;  %v616_v57 = vsel %vm129_vm2, %v609_v55, -inf }
 0x467   :  { %617 = vmax.xlane.f32.xlu0 %v616_v57 }
 0x47d   :  { %711 = vrot.lane.b32.xlu0 %v2482_v16, %s2363_s16 }
 0x481   :  { %887 = vrot.lane.b32.xlu0 %v2479_v12, %s2364_s17 }
 0x4f0   :  { %v615_v58 = vpop.xlane.xlu1 %614 }
 0x4f1   :  { %v619_v59 = vsub.f32 %v531_v50, %v615_v58 }
 0x4f3   :  { %v621_v60 = vmul.f32 1.442695, %v619_v59 }
 0x4f4   :  { %v618_v61 = vpop.xlane.xlu0 %617 }
 0x4f5   :  { %2250 = vpow2.f32 %v621_v60  ;;  %v620_v62 = vsub.f32 %v609_v55, %v618_v61 }
 0x4f7   :  { %v623_v63 = vmul.f32 1.442695, %v620_v62 }
 0x4f8   :  { %v712_v1 = vpop.permute.xlu0 %711 }
 0x4f9   :  { %2252 = vpow2.f32 %v623_v63  ;;  %2117 = vmatpush3.msra.mxu0 %v712_v1 }
 0x4fa   :  { %2127 = vmatprep.subr.bf16.mxu0 %v2358_v0 }
 0x4fc   :  { %v888_v30 = vpop.permute.xlu0 %887 }
 0x4ff   :  { %v2251_v2 = vpop.eup %2250 }
 0x500   :  { %v625_v5 = vsel %vm129_vm2, %v2251_v2, 0.0 }
 0x501   :  { %626 = vadd.xlane.f32.xlu1 %v625_v5 }
 0x503   :  { %v2253_v6 = vpop.eup %2252 }
 0x504   :  { %v628_v8 = vsel %vm129_vm2, %v2253_v6, 0.0 }
 0x505   :  { %629 = vadd.xlane.f32.xlu1 %v628_v8 }
 0x516   :  { %635 = vrot.lane.b32.xlu1 %v2479_v12, %s2363_s16  ;;  %s2370_s16 = smov [#allocation7]  }
 0x51a   :  { %965 = vrot.lane.b32.xlu1 %v2482_v16, %s2364_s17  ;;  %s1960_s17 = sshll.u32 %s2370_s16, 4  ;;  %s1961_s17 = int_to_ptr.vmem [resolvable:$true] %s1960_s17 }
 0x51b   :  { %p2331_p3 = scmp.lt.s32.totalorder %s1961_s17, %s1961_s17 }
 0x51e   :  { %963 = vrot.lane.b32.xlu1 %v2482_v16, %s2365_s18 }
 0x522   :  { %885 = vrot.lane.b32.xlu1 %v2479_v12, %s2365_s18  ;;  %s2326_s18 = scalar_lea.vmem %s1961_s17, 256 }
 0x523   :  { %p2327_p2 = scmp.ne.s32.totalorder %s1961_s17, %s2326_s18  ;;  %p2332_p4 = scmp.lt.s32.totalorder %s2326_s18, %s2326_s18 }
 0x525   :  { %p2333_p5 = por %p2332_p4, %p2331_p3 }
 0x526   :  { %1269 = vrot.lane.b32.xlu1 %v2479_v12, %s2366_s19 }
 0x527   :  { %p2334_p6 = pnand %p2333_p5, %p2327_p2 }
 0x58e   :  { %v627_v10 = vpop.xlane.xlu1 %626 }
 0x58f   :  { %2254 = vrcp.f32 %v627_v10 }
 0x592   :  { %v630_v11 = vpop.xlane.xlu1 %629 }
 0x593   :  { %2256 = vrcp.f32 %v630_v11 }
 0x596   :  { %v636_v13 = vpop.permute.xlu1 %635 }
 0x597   :  { %2112 = vmatpush3.msra.mxu1 %v636_v13 }
 0x598   :  { %2121 = vmatprep.subr.bf16.mxu1 %v2358_v0 }
 0x599   :  { %v2255_v15 = vpop.eup %2254 }
 0x59a   :  { %v633_v17 = vmul.f32 %v2255_v15, %v2251_v2  ;;  %v966_v23 = vpop.permute.xlu1 %965 }
 0x59c   :  { %2114 = vmatmul.mubr.msk.f32.vlgmr.msra.gmra.mrb[8].mxu1 %vm129_vm2, %v633_v17 }
 0x59d   :  { %v2257_v20 = vpop.eup %2256  ;;  %2122 = vmatpush3.bf16.msra.mxu1 %v795_v18  ;;  %2123 = vmatprep.mubr.msk.bf16.mxu1 %vm2359_vm0, %v2358_v0 }
 0x59e   :  { %v634_v21 = vmul.f32 %v2257_v20, %v2253_v6  ;;  %2133 = vmatprep.subr.mxu1 %v2358_v0  ;;  %v964_v24 = vpop.permute.xlu1 %963 }
 0x5a0   :  { %2119 = vmatmul.mubr.msk.f32.vlgmr.msra.gmra.mrb[8].mxu0 %vm129_vm2, %v634_v21  ;;  %v1997_v21 = vld [vmem:[%s2716_s2 + $0x8] sm:$0xf] }
 0x5a1   :  { %2128 = vmatpush3.bf16.msra.mxu0 %v842_v22  ;;  %2129 = vmatprep.mubr.msk.bf16.mxu0 %vm2359_vm0, %v2358_v0  ;;  %v1222_v22 = vsel %vm793_vm3, %v1997_v21, 0  ;;  %v2236_v21 = vld [vmem:[%s2718_s4] sm:$0xff]  }
 0x5a2   :  { %2138 = vmatprep.subr.mxu0 %v2358_v0  ;;  %v886_v35 = vpop.permute.xlu1 %885 }
 0x5a4   :  { %2130 = vmatmul.mubr.msk.bf16.vlgmr.msra.gmra.mrb[12].mxu0 %vm129_vm2, %v455_v51 }
 0x5a5   :  { %2140 = vmatprep.mubr.msk.f32.mxu0 %vm2359_vm0, %v2358_v0 }
 0x5a6   :  { %v1270_v54 = vpop.permute.xlu1 %1269 }
 0x5aa   :  { %2139 = vmatpush3.xpose.msk.msra.mxu0 %vm129_vm2, %v966_v23 }
 0x5ab   :  { %2148 = vmatprep.subr.mxu0 %v2358_v0 }
 0x5ad   :  { %2141 = vmatmul.mubr.msk.f32.vlgmr.msra.gmra.mrb[10].mxu0 %vm129_vm2, %v964_v24 }
 0x5ae   :  { %2150 = vmatprep.mubr.msk.f32.mxu0 %vm2359_vm0, %v2358_v0 }
 0x66f   :  { %v707_v25 = vpop.f32.mrb[8].mxu1 }
 0x670   :  { %v2115_v26 = vpop.f32.mrb[9].mxu1 }
 0x673   :  { %v783_v27 = vpop.f32.mrb[8].mxu0 }
 0x674   :  { %v787_v28 = vpack.c.bf16 %v783_v27, %v707_v25  ;;  %v2120_v29 = vpop.f32.mrb[9].mxu0 }
 0x676   :  { %2124 = vmatmul.mubr.msk.bf16.vlgmr.msra.gmra.mrb[12].mxu1 %vm129_vm2, %v787_v28 }
 0x677   :  { %2134 = vmatpush3.xpose.msk.msra.mxu1 %vm129_vm2, %v888_v30  ;;  %v878_v31 = vpop.f32.mrb[12].mxu0  ;;  %2135 = vmatprep.mubr.msk.f32.mxu1 %vm2359_vm0, %v2358_v0 }
 0x678   :  { %v2131_v32 = vpop.f32.mrb[13].mxu0  ;;  %2143 = vmatprep.subr.mxu1 %v2358_v0 }
 0x679   :  { %v881_v33 = vpop.f32.mrb[14].mxu0 }
 0x67a   :  { %v2132_v34 = vpop.f32.mrb[15].mxu0 }
 0x67e   :  { %2136 = vmatmul.mubr.msk.f32.vlgmr.msra.gmra.mrb[10].mxu1 %vm129_vm2, %v886_v35 }
 0x67f   :  { %2145 = vmatprep.mubr.msk.f32.mxu1 %vm2359_vm0, %v2358_v0 }
 0x680   :  { %v1037_v36 = vpop.f32.mrb[10].mxu0 }
 0x681   :  { %v2142_v37 = vpop.f32.mrb[11].mxu0  ;;  %v1044_v38 = vsel %vm129_vm2, %v1037_v36, -inf }
 0x682   :  { %1045 = vmax.xlane.f32.xlu0 %v1044_v38 }
 0x698   :  { %1139 = vrot.lane.b32.xlu0 %v2482_v16, %s2367_s24 }
 0x69c   :  { %1267 = vrot.lane.b32.xlu0 %v2479_v12, %s2368_s25 }
 0x6a0   :  { %1345 = vrot.lane.b32.xlu0 %v2482_v16, %s2368_s25 }
 0x70f   :  { %v1046_v39 = vpop.xlane.xlu0 %1045 }
 0x710   :  { %v1048_v40 = vsub.f32 %v1037_v36, %v1046_v39 }
 0x712   :  { %v1051_v41 = vmul.f32 1.442695, %v1048_v40 }
 0x713   :  { %v1140_v42 = vpop.permute.xlu0 %1139 }
 0x714   :  { %2258 = vpow2.f32 %v1051_v41  ;;  %2149 = vmatpush3.msra.mxu0 %v1140_v42  ;;  %v2005_v42 = vld [vmem:[%s2716_s2 + $0xc] sm:$0xf] }
 0x715   :  { %2159 = vmatprep.subr.mxu0 %v2358_v0 }
 0x717   :  { %v1268_v58 = vpop.permute.xlu0 %1267 }
 0x71b   :  { %v1346_v60 = vpop.permute.xlu0 %1345 }
 0x71e   :  { %v2259_v43 = vpop.eup %2258 }
 0x71f   :  { %v1056_v44 = vsel %vm129_vm2, %v2259_v43, 0.0 }
 0x720   :  { %1057 = vadd.xlane.f32.xlu1 %v1056_v44 }
 0x731   :  { %1347 = vrot.lane.b32.xlu1 %v2482_v16, %s2366_s19 }
 0x749   :  { %v831_v45 = vpop.f32.mrb[12].mxu1 }
 0x74a   :  { %v2588_v46 = vadd.f32 %v878_v31, %v831_v45  ;;  %v2125_v47 = vpop.f32.mrb[13].mxu1 }
 0x74b   :  { %v834_v48 = vpop.f32.mrb[14].mxu1 }
 0x74c   :  { %v2590_v49 = vadd.f32 %v881_v33, %v834_v48  ;;  %v2126_v50 = vpop.f32.mrb[15].mxu1 }
 0x751   :  { %v959_v51 = vpop.f32.mrb[10].mxu1 }
 0x752   :  { %v2137_v52 = vpop.f32.mrb[11].mxu1  ;;  %v1041_v53 = vsel %vm129_vm2, %v959_v51, -inf }
 0x755   :  { %1042 = vmax.xlane.f32.xlu1 %v1041_v53 }
 0x7ad   :  { %v1058_v55 = vpop.xlane.xlu1 %1057 }
 0x7ae   :  { %2260 = vrcp.f32 %v1058_v55 }
 0x7b1   :  { %v1348_v59 = vpop.permute.xlu1 %1347 }
 0x7b8   :  { %v2261_v56 = vpop.eup %2260 }
 0x7b9   :  { %v1062_v57 = vmul.f32 %v2261_v56, %v2259_v43  ;;  %v1604_v43 = vsel %vm793_vm3, %v2005_v42, 0  ;;  %v2239_v42 = vld [vmem:[%s2718_s4 + $0x18] sm:$0xff]  }
 0x7bb   :  { %2151 = vmatmul.mubr.msk.f32.vlgmr.msra.gmra.mrb[16].mxu0 %vm129_vm2, %v1062_v57  ;;  %v1651_v57 = vsub.s32 1, %v2473_v7 }
 0x7bc   :  { %2160 = vmatpush3.xpose.msk.msra.mxu0 %vm129_vm2, %v1270_v54  ;;  %2161 = vmatprep.mubr.msk.f32.mxu0 %vm2359_vm0, %v2358_v0 }
 0x7bd   :  { %2164 = vmatprep.subr.mxu0 %v2358_v0 }
 0x7bf   :  { %2162 = vmatmul.mubr.msk.f32.vlgmr.msra.gmra.mrb[18].mxu0 %vm129_vm2, %v1268_v58  ;;  %v1652_v58 = vrot.slane %v2476_v9, %v1651_v57 }
 0x7c0   :  { %2165 = vmatpush3.xpose.msk.msra.mxu0 %vm129_vm2, %v1348_v59  ;;  %2166 = vmatprep.mubr.msk.f32.mxu0 %vm2359_vm0, %v2358_v0 }
 0x7c1   :  { %2174 = vmatprep.subr.mxu0 %v2358_v0 }
 0x7c3   :  { %2167 = vmatmul.mubr.msk.f32.vlgmr.msra.gmra.mrb[20].mxu0 %vm129_vm2, %v1346_v60 }
 0x7c4   :  { %2176 = vmatprep.mubr.msk.f32.mxu0 %vm2359_vm0, %v2358_v0 }
 0x7e2   :  { %v1043_v61 = vpop.xlane.xlu1 %1042 }
 0x7e3   :  { %v1047_v62 = vsub.f32 %v959_v51, %v1043_v61 }
 0x7e5   :  { %v1049_v63 = vmul.f32 1.442695, %v1047_v62 }
 0x7e7   :  { %2262 = vpow2.f32 %v1049_v63 }
 0x7f1   :  { %v2263_v1 = vpop.eup %2262 }
 0x7f2   :  { %v1053_v2 = vsel %vm129_vm2, %v2263_v1, 0.0 }
 0x7f3   :  { %1054 = vadd.xlane.f32.xlu0 %v1053_v2 }
 0x809   :  { %1063 = vrot.lane.b32.xlu0 %v2479_v12, %s2367_s24 }
 0x80d   :  { %1521 = vrot.lane.b32.xlu0 %v2482_v16, %s2369_s26 }
 0x880   :  { %v1055_v5 = vpop.xlane.xlu0 %1054 }
 0x881   :  { %2264 = vrcp.f32 %v1055_v5 }
 0x884   :  { %v1064_v6 = vpop.permute.xlu0 %1063 }
 0x885   :  { %2144 = vmatpush3.msra.mxu1 %v1064_v6 }
 0x886   :  { %2153 = vmatprep.subr.bf16.mxu1 %v2358_v0 }
 0x888   :  { %v1522_v8 = vpop.permute.xlu0 %1521 }
 0x889   :  { %2175 = vmatpush3.msra.mxu0 %v1522_v8 }
 0x88a   :  { %2185 = vmatprep.subr.bf16.mxu0 %v2358_v0 }
 0x88b   :  { %v2265_v10 = vpop.eup %2264 }
 0x88c   :  { %v1061_v11 = vmul.f32 %v2265_v10, %v2263_v1 }
 0x88e   :  { %2146 = vmatmul.mubr.msk.f32.vlgmr.msra.gmra.mrb[16].mxu1 %vm129_vm2, %v1061_v11  ;;  %v1211_v13 = vpop.f32.mrb[16].mxu0 }
 0x88f   :  { %v2152_v14 = vpop.f32.mrb[17].mxu0  ;;  %2155 = vmatprep.mubr.msk.bf16.mxu1 %vm2359_vm0, %v2358_v0  ;;  %2154 = vmatpush3.bf16.msra.mxu1 %v1222_v22  ;;  %v2237_v22 = vld [vmem:[%s2718_s4 + $0x8] sm:$0xff]  }
 0x890   :  { %2169 = vmatprep.subr.mxu1 %v2358_v0 }
 0x892   :  { %v1341_v16 = vpop.f32.mrb[18].mxu0 }
 0x893   :  { %v2163_v15 = vpop.f32.mrb[19].mxu0  ;;  %v1423_v17 = vsel %vm129_vm2, %v1341_v16, -inf }
 0x894   :  { %1424 = vmax.xlane.f32.xlu1 %v1423_v17 }
 0x896   :  { %v1419_v18 = vpop.f32.mrb[20].mxu0 }
 0x897   :  { %v2168_v19 = vpop.f32.mrb[21].mxu0  ;;  %v1426_v20 = vsel %vm129_vm2, %v1419_v18, -inf }
 0x898   :  { %1427 = vmax.xlane.f32.xlu1 %v1426_v20  ;;  %v2234_v20 = vld [vmem:[#allocation2] sm:$0xff]  }
 0x921   :  { %v1425_v23 = vpop.xlane.xlu1 %1424 }
 0x922   :  { %v1429_v24 = vsub.f32 %v1341_v16, %v1425_v23 }
 0x924   :  { %v1431_v25 = vmul.f32 1.442695, %v1429_v24 }
 0x925   :  { %v1428_v26 = vpop.xlane.xlu1 %1427 }
 0x926   :  { %2266 = vpow2.f32 %v1431_v25  ;;  %v1430_v27 = vsub.f32 %v1419_v18, %v1428_v26 }
 0x928   :  { %v1433_v28 = vmul.f32 1.442695, %v1430_v27 }
 0x92a   :  { %2268 = vpow2.f32 %v1433_v28 }
 0x930   :  { %v2267_v29 = vpop.eup %2266 }
 0x931   :  { %v1435_v30 = vsel %vm129_vm2, %v2267_v29, 0.0 }
 0x932   :  { %1436 = vadd.xlane.f32.xlu1 %v1435_v30 }
 0x934   :  { %v2269_v31 = vpop.eup %2268 }
 0x935   :  { %v1438_v32 = vsel %vm129_vm2, %v2269_v31, 0.0 }
 0x936   :  { %1439 = vadd.xlane.f32.xlu1 %v1438_v32 }
 0x947   :  { %1445 = vrot.lane.b32.xlu1 %v2479_v12, %s2369_s26 }
 0x961   :  { %v1135_v33 = vpop.f32.mrb[16].mxu1 }
 0x962   :  { %v1215_v34 = vpack.c.bf16 %v1211_v13, %v1135_v33  ;;  %v2147_v35 = vpop.f32.mrb[17].mxu1  ;;  %v1692_v33 = vsub.s32 3, %v2473_v7 }
 0x964   :  { %2156 = vmatmul.mubr.msk.bf16.vlgmr.msra.gmra.mrb[20].mxu1 %vm129_vm2, %v1215_v34 }
 0x965   :  { %2171 = vmatprep.mubr.msk.f32.mxu1 %vm2359_vm0, %v2358_v0 }
 0x9bf   :  { %v1437_v36 = vpop.xlane.xlu1 %1436 }
 0x9c0   :  { %2270 = vrcp.f32 %v1437_v36 }
 0x9c3   :  { %v1440_v37 = vpop.xlane.xlu1 %1439 }
 0x9c4   :  { %2272 = vrcp.f32 %v1440_v37  ;;  %v1693_v37 = vrot.slane %v2476_v9, %v1692_v33 }
 0x9c7   :  { %v1446_v38 = vpop.permute.xlu1 %1445 }
 0x9c8   :  { %2170 = vmatpush3.msra.mxu1 %v1446_v38 }
 0x9c9   :  { %2179 = vmatprep.subr.bf16.mxu1 %v2358_v0 }
 0x9ca   :  { %v2271_v39 = vpop.eup %2270 }
 0x9cb   :  { %v1443_v40 = vmul.f32 %v2271_v39, %v2267_v29  ;;  %v1686_v29 = vsub.s32 2, %v2473_v7 }
 0x9cd   :  { %2172 = vmatmul.mubr.msk.f32.vlgmr.msra.gmra.mrb[18].mxu1 %vm129_vm2, %v1443_v40 }
 0x9ce   :  { %v2273_v12 = vpop.eup %2272  ;;  %2181 = vmatprep.mubr.msk.bf16.mxu1 %vm2359_vm0, %v2358_v0  ;;  %2180 = vmatpush3.bf16.msra.mxu1 %v1604_v43  ;;  %v1703_v43 = vsub.s32 4, %v2473_v7 }
 0x9cf   :  { %v1444_v41 = vmul.f32 %v2273_v12, %v2269_v31  ;;  %2193 = vmatprep.subr.bf16.mxu1 %v2358_v0  ;;  %v1687_v31 = vrot.slane %v2476_v9, %v1686_v29 }
 0x9d1   :  { %2177 = vmatmul.mubr.msk.f32.vlgmr.msra.gmra.mrb[22].mxu0 %vm129_vm2, %v1444_v41  ;;  %v2238_v41 = vld [vmem:[%s2718_s4 + $0x10] sm:$0xff]  }
 0x9d2   :  { %2189 = vmatprep.mubr.msk.bf16.mxu0 %vm2359_vm0, %v2358_v0  ;;  %2186 = vmatpush3.bf16.msra.mxu0 %v2234_v20 }
 0x9d3   :  { %2187 = vmatprep.subr.bf16.mxu0 %v2358_v0 }
 0xa37   :  { %v1258_v44 = vpop.f32.mrb[20].mxu1 }
 0xa38   :  { %v1265_v45 = vadd.f32 %v1258_v44, %v2588_v46  ;;  %v2157_v47 = vpop.f32.mrb[21].mxu1  ;;  %v1704_v44 = vrot.slane %v2476_v9, %v1703_v43 }
 0xa39   :  { %v1261_v48 = vpop.f32.mrb[22].mxu1 }
 0xa3a   :  { %v1266_v50 = vadd.f32 %v1261_v48, %v2590_v49  ;;  %v2158_v51 = vpop.f32.mrb[23].mxu1 }
 0xaa0   :  { %v1517_v52 = vpop.f32.mrb[18].mxu1 }
 0xaa1   :  { %v2173_v53 = vpop.f32.mrb[19].mxu1 }
 0xaa4   :  { %v1593_v54 = vpop.f32.mrb[22].mxu0 }
 0xaa5   :  { %v1597_v55 = vpack.c.bf16 %v1593_v54, %v1517_v52  ;;  %v2178_v56 = vpop.f32.mrb[23].mxu0 }
 0xaa6   :  { %v1774_v56 = vsub.s32 5, %v2473_v7 }
 0xaa7   :  { %2182 = vmatmul.mubr.msk.bf16.vlgmr.msra.gmra.mrb[24].mxu1 %vm129_vm2, %v1597_v55 }
 0xaa8   :  { %2201 = vmatprep.mubr.msk.bf16.mxu1 %vm2359_vm0, %v2358_v0  ;;  %2194 = vmatpush3.bf16.msra.mxu1 %v2236_v21  ;;  %v1775_v57 = vrot.slane %v2476_v9, %v1774_v56 }
 0xaa9   :  { %2195 = vmatprep.subr.bf16.mxu1 %v2358_v0 }
 0xaac   :  { %2196 = vmatpush3.bf16.msra.mxu1 %v2237_v22 }
 0xaad   :  { %2197 = vmatprep.subr.bf16.mxu1 %v2358_v0 }
 0xab0   :  { %2198 = vmatpush3.bf16.msra.mxu1 %v2238_v41 }
 0xab1   :  { %2199 = vmatprep.subr.bf16.mxu1 %v2358_v0 }
 0xab4   :  { %2200 = vmatpush3.bf16.msra.mxu1 %v2239_v42 }
 0xb7a   :  { %v1640_v46 = vpop.f32.mrb[24].mxu1 }
 0xb7b   :  { %v1647_v59 = vadd.f32 %v1640_v46, %v1265_v45  ;;  %v2183_v60 = vpop.f32.mrb[25].mxu1 }
 0xb7c   :  { %v1643_v61 = vpop.f32.mrb[26].mxu1 }
 0xb7d   :  { %v1653_v49 = vadd.f32 %v1652_v58, %v1647_v59  ;;  %v1648_v62 = vadd.f32 %v1643_v61, %v1266_v50  ;;  %v2184_v63 = vpop.f32.mrb[27].mxu1 }
 0xb7f   :  { %v1654_v1 = vadd.f32 %v1652_v58, %v1648_v62  ;;  %v1655_v2 = vadd.f32 %v1653_v49, %v2459_v3 }
 0xb81   :  { %v1657_v5 = vsel %vm81_vm1, %v1655_v2, 0.0  ;;  %v1656_v6 = vadd.f32 %v1654_v1, %v2464_v4  ;;  %v2235_v4 = vld [vmem:[#allocation2 + $0x8] sm:$0xff]  }
 0xb82   :  { %1658 = vadd.xlane.f32.xlu0 %v1657_v5  ;;  %2188 = vmatpush3.bf16.msra.mxu0 %v2235_v4 }
 0xb83   :  { %v1660_v8 = vsel %vm81_vm1, %v1656_v6, 0.0  ;;  %2205 = vmatprep.subr.bf16.mxu0 %v2358_v0 }
 0xb84   :  { %1661 = vadd.xlane.f32.xlu1 %v1660_v8 }
 0xc0f   :  { %v1659_v10 = vpop.xlane.xlu0 %1658 }
 0xc10   :  { %v1664_v11 = vmul.f32 0.03125, %v1659_v10 }
 0xc11   :  { %v1662_v13 = vpop.xlane.xlu1 %1661 }
 0xc12   :  { %v1666_v14 = vsub.f32 %v1655_v2, %v1664_v11  ;;  %v1665_v16 = vmul.f32 0.03125, %v1662_v13 }
 0xc14   :  { %v1667_v15 = vsub.f32 %v1656_v6, %v1665_v16  ;;  %v1668_v17 = vmul.f32 %v1666_v14, %v1666_v14 }
 0xc16   :  { %v1670_v18 = vsel %vm81_vm1, %v1668_v17, 0.0  ;;  %v1669_v19 = vmul.f32 %v1667_v15, %v1667_v15 }
 0xc17   :  { %1671 = vadd.xlane.f32.xlu0 %v1670_v18  ;;  %v2240_v18 = vld [vmem:[%s2719_s5] sm:$0xff]  }
 0xc18   :  { %v1673_v3 = vsel %vm81_vm1, %v1669_v19, 0.0  ;;  %v2241_v19 = vld [vmem:[%s2719_s5 + $0x8] sm:$0xff]  }
 0xc1b   :  { %1674 = vadd.xlane.f32.xlu0 %v1673_v3 }
 0xca4   :  { %v1672_v23 = vpop.xlane.xlu0 %1671 }
 0xca5   :  { %v1676_v24 = vmul.f32 0.03125, %v1672_v23 }
 0xca7   :  { %v1678_v25 = vadd.f32 1e-05, %v1676_v24  ;;  %v1875_v24 = vsub.s32 6, %v2473_v7 }
 0xca8   :  { %v1675_v26 = vpop.xlane.xlu0 %1674 }
 0xca9   :  { %2274 = vrsqrt.f32 %v1678_v25  ;;  %v1677_v27 = vmul.f32 0.03125, %v1675_v26  ;;  %v1876_v26 = vrot.slane %v2476_v9, %v1875_v24 }
 0xcab   :  { %v1679_v28 = vadd.f32 1e-05, %v1677_v27 }
 0xcad   :  { %2276 = vrsqrt.f32 %v1679_v28  ;;  %v1881_v28 = vsub.s32 7, %v2473_v7 }
 0xcb3   :  { %v2275_v30 = vpop.eup %2274 }
 0xcb4   :  { %v1682_v32 = vmul.f32 %v2275_v30, %v1666_v14 }
 0xcb6   :  { %v1688_v35 = vmul.f32 %v1687_v31, %v1682_v32 }
 0xcb7   :  { %v2277_v34 = vpop.eup %2276 }
 0xcb8   :  { %v1683_v36 = vmul.f32 %v2277_v34, %v1667_v15  ;;  %v1694_v39 = vadd.f32 %v1693_v37, %v1688_v35 }
 0xcba   :  { %v1689_v38 = vmul.f32 %v1687_v31, %v1683_v36  ;;  %v1882_v31 = vrot.slane %v2476_v9, %v1881_v28  ;;  %v2015_v36 = vld [vmem:[%s2721_s7] ss:$0 sm:$0xff] }
 0xcbc   :  { %v1695_v40 = vadd.f32 %v1693_v37, %v1689_v38 }
 0xcbe   :  { %v1696_v12 = vpack.c.bf16 %v1695_v40, %v1694_v39 }
 0xcc0   :  { %2190 = vmatmul.mubr.msk.bf16.vlgmr.msra.gmra.mrb[24].mxu0 %vm81_vm1, %v1696_v12 }
 0xcc1   :  { %2209 = vmatprep.mubr.msk.bf16.mxu0 %vm2359_vm0, %v2358_v0  ;;  %2206 = vmatpush3.bf16.msra.mxu0 %v2240_v18 }
 0xcc2   :  { %2207 = vmatprep.subr.bf16.mxu0 %v2358_v0 }
 0xcc5   :  { %2208 = vmatpush3.bf16.msra.mxu0 %v2241_v19 }
 0xd93   :  { %v1754_v45 = vpop.f32.mrb[24].mxu0 }
 0xd94   :  { %v1755_v47 = vadd.f32 %v1754_v45, %v1704_v44  ;;  %v2191_v48 = vpop.f32.mrb[25].mxu0 }
 0xd95   :  { %v1757_v50 = vpop.f32.mrb[26].mxu0 }
 0xd96   :  { %v1758_v51 = vadd.f32 %v1757_v50, %v1704_v44  ;;  %v2192_v52 = vpop.f32.mrb[27].mxu0  ;;  %v1761_v53 = vmax.f32 %v1755_v47, 0.0 }
 0xd98   :  { %v1762_v54 = vmax.f32 %v1758_v51, 0.0 }
 0xd9a   :  { %v1763_v55 = vpack.c.bf16 %v1762_v54, %v1761_v53 }
 0xd9c   :  { %2202 = vmatmul.mubr.msk.bf16.vlgmr.msra.gmra.mrb[28].mxu1 %vm1800_vm4, %v1763_v55 }
 0xe6f   :  { %v1838_v58 = vpop.f32.mrb[28].mxu1 }
 0xe70   :  { %v1839_v46 = vadd.f32 %v1838_v58, %v1775_v57  ;;  %v2203_v59 = vpop.f32.mrb[29].mxu1 }
 0xe71   :  { %v1841_v60 = vpop.f32.mrb[30].mxu1 }
 0xe72   :  { %v1842_v61 = vadd.f32 %v1841_v60, %v1775_v57  ;;  %v2204_v49 = vpop.f32.mrb[31].mxu1  ;;  %v1845_v62 = vadd.f32 %v1839_v46, %v1694_v39 }
 0xe74   :  { %v1847_v63 = vsel %vm81_vm1, %v1845_v62, 0.0  ;;  %v1846_v1 = vadd.f32 %v1842_v61, %v1695_v40 }
 0xe75   :  { %1848 = vadd.xlane.f32.xlu0 %v1847_v63 }
 0xe76   :  { %v1850_v2 = vsel %vm81_vm1, %v1846_v1, 0.0 }
 0xe79   :  { %1851 = vadd.xlane.f32.xlu0 %v1850_v2 }
 0xf02   :  { %v1849_v5 = vpop.xlane.xlu0 %1848 }
 0xf03   :  { %v1853_v6 = vmul.f32 0.03125, %v1849_v5 }
 0xf05   :  { %v1855_v8 = vsub.f32 %v1845_v62, %v1853_v6 }
 0xf06   :  { %v1852_v10 = vpop.xlane.xlu0 %1851 }
 0xf07   :  { %v1854_v11 = vmul.f32 0.03125, %v1852_v10  ;;  %v1857_v13 = vmul.f32 %v1855_v8, %v1855_v8 }
 0xf09   :  { %v1856_v14 = vsub.f32 %v1846_v1, %v1854_v11  ;;  %v1859_v16 = vsel %vm81_vm1, %v1857_v13, 0.0 }
 0xf0a   :  { %1860 = vadd.xlane.f32.xlu1 %v1859_v16 }
 0xf0b   :  { %v1858_v15 = vmul.f32 %v1856_v14, %v1856_v14 }
 0xf0d   :  { %v1862_v17 = vsel %vm81_vm1, %v1858_v15, 0.0 }
 0xf0e   :  { %1863 = vadd.xlane.f32.xlu0 %v1862_v17 }
 0xf97   :  { %v1861_v3 = vpop.xlane.xlu1 %1860 }
 0xf98   :  { %v1865_v20 = vmul.f32 0.03125, %v1861_v3 }
 0xf9a   :  { %v1867_v4 = vadd.f32 1e-05, %v1865_v20 }
 0xf9b   :  { %v1864_v21 = vpop.xlane.xlu0 %1863 }
 0xf9c   :  { %2278 = vrsqrt.f32 %v1867_v4  ;;  %v1866_v22 = vmul.f32 0.03125, %v1864_v21 }
 0xf9e   :  { %v1868_v23 = vadd.f32 1e-05, %v1866_v22 }
 0xfa0   :  { %2280 = vrsqrt.f32 %v1868_v23 }
 0xfa6   :  { %v2279_v25 = vpop.eup %2278 }
 0xfa7   :  { %v1871_v27 = vmul.f32 %v2279_v25, %v1855_v8 }
 0xfa9   :  { %v1877_v30 = vmul.f32 %v1876_v26, %v1871_v27 }
 0xfaa   :  { %v2281_v29 = vpop.eup %2280 }
 0xfab   :  { %v1872_v0 = vmul.f32 %v2281_v29, %v1856_v14  ;;  %v1883_v33 = vadd.f32 %v1882_v31, %v1877_v30 }
 0xfad   :  { %v1878_v32 = vmul.f32 %v1876_v26, %v1872_v0 }
 0xfaf   :  { %v1884_v34 = vadd.f32 %v1882_v31, %v1878_v32 }
 0xfb1   :  { %v1885_v35 = vpack.c.bf16 %v1884_v34, %v1883_v33 }
 0xfb3   :  { %2210 = vmatmul.mubr.msk.bf16.vlgmr.msra.gmra.mrb[28].mxu0 %vm81_vm1, %v1885_v35 }
0x1086   :  { %v1946_v37 = vpop.f32.mrb[28].mxu0 }
0x1087   :  { %v1947_v38 = vadd.f32 %v2015_v36, %v1946_v37  ;;  %v2211_v7 = vpop.f32.mrb[29].mxu0 }
0x1088   :  { %v1949_v39 = vpop.f32.mrb[30].mxu0 }
0x1089   :  { %1953 = vst [vmem:[#allocation7] sm:$0xff] %v1947_v38  ;;  %v1950_v40 = vadd.f32 %v2015_v36, %v1949_v39  ;;  %v2212_v12 = vpop.f32.mrb[31].mxu0 }
0x108b   :  { %1954 = vst [vmem:[#allocation7 + $0x8] sm:$0xff] %v1950_v40 }
0x108c   :  { %2337 = shalt.err (!%p2334_p6)
}
0x108d   :  { %s2338_s20 = scalar_lea.hbm %s2722_s8, 256 }
0x108e   :  { %p2339_p7 = scmp.ne.s32.totalorder %s2722_s8, %s2338_s20  ;;  %p2342_p8 = scmp.lt.u32.totalorder %s2338_s20, %s2722_s8 }
0x1090   :  { %p2344_p9 = pnand %p2342_p8, %p2339_p7 }
0x1092   :  { %2347 = shalt.err (!%p2344_p9)
}
0x1093   :  { %s2371_s25 = smov 128   ;;  %s2372_s26 = smov 8  }
0x1094   :  { %1966 = dma.vmem_to_hbm [thread:$0]  %s1961_s17, 256, %s2722_s8, [#allocation4], %s2371_s25, %s2371_s25, %s2372_s26  }
0x1095   :  { %2352 = dma.done.wait [#allocation4], 256  }
0x1096   :  { %2353 = vsyncadd [#allocation4], 4294967040 }
0x1097   :  { %1970 = vsyncpa [#allocation3], 1 }
0x1098   :  { %1971 = vsyncpa [#allocation6], 1 }
0x1099   :  { %1972 = vsyncpa [#allocation4], 1 }

</bundles_post_ra>
